<compile_context>
chip_gen: v6e
topology: v6e:2x2x1
jax: 0.10.0
libtpu: 0.0.40
codegen_flags: <defaults>
</compile_context>

<pallas_src>
import functools

import jax
import jax.numpy as jnp
from jax.experimental import pallas as pl
from jax.experimental.pallas import tpu as pltpu

_LANES = 128
_STATS_ROWS = 8   # sublane-aligned stats slab per core; row0 = sum, row1 = sum(x^2)


def _round_up(x, m):
    return (x + m - 1) // m * m


def _cdiv(a, b):
    return -(-a // b)


def _pad2(a, rows, cols):
    return jnp.pad(a, ((0, rows - a.shape[0]), (0, cols - a.shape[1])))


@functools.lru_cache(maxsize=None)
def _vmem_limits():
    """Generation-aware (scoped VMEM limit, self-imposed working-set budget)."""
    limit = 48 * 1024 * 1024                                 # safe on v5e/v6e/v7x
    try:
        cap = int(pltpu.get_tpu_info().vmem_capacity_bytes)
        limit = min((cap * 3) // 4, 96 * 1024 * 1024)        # ~96MiB v5e/v6e, ~48MiB v7x
    except Exception:
        pass
    return limit, (limit * 3) // 4


# ---------------------------------------------------------------------------
# Pallas kernels
# ---------------------------------------------------------------------------

def _conv_stats_kernel(p_ref, w_ref, acc_ref, st_ref):
    """Row-tiled conv matmul + per-core accumulation of sum / sum-of-squares.

    p_ref : (TM, Kp)             im2col patch tile (bf16 or f32)
    w_ref : (Kp, Coutp)          flattened conv weight (same block every step)
    acc_ref : (TM, Coutp)        raw conv output tile (f32)
    st_ref : (8, Coutp)          per-core resident stats slab (row0=sum, row1=sumsq)
    """
    acc = jnp.dot(p_ref[...], w_ref[...], preferred_element_type=jnp.float32)
    acc_ref[...] = acc

    @pl.when(pl.program_id(1) == 0)
    def _init():
        st_ref[...] = jnp.zeros_like(st_ref)

    st_ref[0:1, :] = st_ref[0:1, :] + jnp.sum(acc, axis=0, keepdims=True)
    st_ref[1:2, :] = st_ref[1:2, :] + jnp.sum(acc * acc, axis=0, keepdims=True)


def _conv_sc_stats_kernel(p_ref, w_ref, psc_ref, wsc_ref,
                          acc_ref, st_ref, accsc_ref, stsc_ref):
    """conv2 matmul+stats fused with the 1x1 projection-shortcut matmul+stats."""
    acc = jnp.dot(p_ref[...], w_ref[...], preferred_element_type=jnp.float32)
    accsc = jnp.dot(psc_ref[...], wsc_ref[...], preferred_element_type=jnp.float32)
    acc_ref[...] = acc
    accsc_ref[...] = accsc

    @pl.when(pl.program_id(1) == 0)
    def _init():
        st_ref[...] = jnp.zeros_like(st_ref)
        stsc_ref[...] = jnp.zeros_like(stsc_ref)

    st_ref[0:1, :] = st_ref[0:1, :] + jnp.sum(acc, axis=0, keepdims=True)
    st_ref[1:2, :] = st_ref[1:2, :] + jnp.sum(acc * acc, axis=0, keepdims=True)
    stsc_ref[0:1, :] = stsc_ref[0:1, :] + jnp.sum(accsc, axis=0, keepdims=True)
    stsc_ref[1:2, :] = stsc_ref[1:2, :] + jnp.sum(accsc * accsc, axis=0, keepdims=True)


def _bn_act_kernel(acc_ref, s_ref, t_ref, o_ref, *, relu):
    """BN folded to a single per-channel FMA: y = acc * s + t (+ ReLU)."""
    y = acc_ref[...] * s_ref[...] + t_ref[...]
    if relu:
        y = jnp.maximum(y, 0.0)
    o_ref[...] = y.astype(o_ref.dtype)


def _bn_add_relu_kernel(acc_ref, s_ref, t_ref, sc_ref, ss_ref, st_ref, o_ref):
    """Fused conv2 epilogue: BN(main) + BN(shortcut)/identity + residual + ReLU."""
    y = acc_ref[...] * s_ref[...] + t_ref[...]
    y = y + sc_ref[...] * ss_ref[...] + st_ref[...]
    o_ref[...] = jnp.maximum(y, 0.0).astype(o_ref.dtype)


# ---------------------------------------------------------------------------
# pallas_call wrappers
# ---------------------------------------------------------------------------

def _row_spec(tm, cols, ntc):
    return pl.BlockSpec((tm, cols), lambda c, i: (c * ntc + i, 0))


def _w_spec(shape):
    return pl.BlockSpec(shape, lambda c, i: (0, 0))


def _stats_spec(coutp):
    return pl.BlockSpec((_STATS_ROWS, coutp), lambda c, i: (c, 0))


def conv_matmul_stats(patches, w, tm, ncores, ntc):
    vmem_limit, _ = _vmem_limits()
    np_, kp = patches.shape
    coutp = w.shape[1]
    mm = jnp.dtype(patches.dtype).itemsize
    cost = pl.CostEstimate(
        flops=int(2 * np_ * kp * coutp), transcendentals=0,
        bytes_accessed=int(np_ * kp * mm + kp * coutp * mm + np_ * coutp * 4))
    return pl.pallas_call(
        _conv_stats_kernel,
        out_shape=(jax.ShapeDtypeStruct((np_, coutp), jnp.float32),
                   jax.ShapeDtypeStruct((ncores * _STATS_ROWS, coutp), jnp.float32)),
        grid=(ncores, ntc),
        in_specs=[_row_spec(tm, kp, ntc), _w_spec((kp, coutp))],
        out_specs=(_row_spec(tm, coutp, ntc), _stats_spec(coutp)),
        compiler_params=pltpu.CompilerParams(
            dimension_semantics=("parallel", "arbitrary"),
            vmem_limit_bytes=vmem_limit),
        cost_estimate=cost,
    )(patches, w)


def conv_sc_matmul_stats(patches, w, psc, wsc, tm, ncores, ntc):
    vmem_limit, _ = _vmem_limits()
    np_, kp = patches.shape
    ksc = psc.shape[1]
    coutp = w.shape[1]
    mm = jnp.dtype(patches.dtype).itemsize
    cost = pl.CostEstimate(
        flops=int(2 * np_ * (kp + ksc) * coutp), transcendentals=0,
        bytes_accessed=int(np_ * (kp + ksc) * mm + (kp + ksc) * coutp * mm
                           + 2 * np_ * coutp * 4))
    return pl.pallas_call(
        _conv_sc_stats_kernel,
        out_shape=(jax.ShapeDtypeStruct((np_, coutp), jnp.float32),
                   jax.ShapeDtypeStruct((ncores * _STATS_ROWS, coutp), jnp.float32),
                   jax.ShapeDtypeStruct((np_, coutp), jnp.float32),
                   jax.ShapeDtypeStruct((ncores * _STATS_ROWS, coutp), jnp.float32)),
        grid=(ncores, ntc),
        in_specs=[_row_spec(tm, kp, ntc), _w_spec((kp, coutp)),
                  _row_spec(tm, ksc, ntc), _w_spec((ksc, coutp))],
        out_specs=(_row_spec(tm, coutp, ntc), _stats_spec(coutp),
                   _row_spec(tm, coutp, ntc), _stats_spec(coutp)),
        compiler_params=pltpu.CompilerParams(
            dimension_semantics=("parallel", "arbitrary"),
            vmem_limit_bytes=vmem_limit),
        cost_estimate=cost,
    )(patches, w, psc, wsc)


def bn_act(acc, s, t, tm, relu, out_dtype):
    vmem_limit, _ = _vmem_limits()
    np_, coutp = acc.shape
    nt = np_ // tm
    kern = functools.partial(_bn_act_kernel, relu=relu)
    return pl.pallas_call(
        kern,
        out_shape=jax.ShapeDtypeStruct((np_, coutp), out_dtype),
        grid=(nt,),
        in_specs=[pl.BlockSpec((tm, coutp), lambda i: (i, 0)),
                  pl.BlockSpec((1, coutp), lambda i: (0, 0)),
                  pl.BlockSpec((1, coutp), lambda i: (0, 0))],
        out_specs=pl.BlockSpec((tm, coutp), lambda i: (i, 0)),
        compiler_params=pltpu.CompilerParams(
            dimension_semantics=("parallel",), vmem_limit_bytes=vmem_limit),
    )(acc, s, t)


def bn_add_relu(acc, s, t, sc, ss, st, tm):
    vmem_limit, _ = _vmem_limits()
    np_, coutp = acc.shape
    nt = np_ // tm
    return pl.pallas_call(
        _bn_add_relu_kernel,
        out_shape=jax.ShapeDtypeStruct((np_, coutp), jnp.float32),
        grid=(nt,),
        in_specs=[pl.BlockSpec((tm, coutp), lambda i: (i, 0)),
                  pl.BlockSpec((1, coutp), lambda i: (0, 0)),
                  pl.BlockSpec((1, coutp), lambda i: (0, 0)),
                  pl.BlockSpec((tm, coutp), lambda i: (i, 0)),
                  pl.BlockSpec((1, coutp), lambda i: (0, 0)),
                  pl.BlockSpec((1, coutp), lambda i: (0, 0))],
        out_specs=pl.BlockSpec((tm, coutp), lambda i: (i, 0)),
        compiler_params=pltpu.CompilerParams(
            dimension_semantics=("parallel",), vmem_limit_bytes=vmem_limit),
    )(acc, s, t, sc, ss, st)


# ---------------------------------------------------------------------------
# Glue (pure data movement / tiny per-channel math in plain JAX)
# ---------------------------------------------------------------------------

def im2col(x_nhwc, k, stride, pad):
    # TODO(synk): replace with an in-kernel halo DMA + 9 accumulated matmuls.
    B, H, W, C = x_nhwc.shape
    xp = jnp.pad(x_nhwc, ((0, 0), (pad, pad), (pad, pad), (0, 0)))
    Ho = (H + 2 * pad - k) // stride + 1
    Wo = (W + 2 * pad - k) // stride + 1
    cols = []
    for dh in range(k):
        for dw in range(k):
            cols.append(xp[:, dh:dh + (Ho - 1) * stride + 1:stride,
                            dw:dw + (Wo - 1) * stride + 1:stride, :])
    patches = jnp.concatenate(cols, axis=-1)          # (B, Ho, Wo, k*k*C)
    return patches.reshape(B * Ho * Wo, k * k * C)


def _bn_scale_shift(stats, gamma_p, beta_p, n, eps):
    # Reduce per-core stats slabs, then per-channel math only (Coutp elements).
    st = jnp.sum(stats.reshape(-1, _STATS_ROWS, stats.shape[-1]), axis=0)
    mean = st[0] / n
    var = jnp.maximum(st[1] / n - mean * mean, 0.0)   # biased (train-mode) var
    s = gamma_p * jax.lax.rsqrt(var + eps)
    t = beta_p - mean * s
    return s[None, :], t[None, :]


def _plan_tiles(n, k_main, k_sc, coutp, mm_bytes):
    """Pick a row tile TM against the VMEM budget + a megacore split (ncores, ntc)."""
    _, budget = _vmem_limits()
    target = n if n < 512 else max(256, _cdiv(n, 2))   # leave work for 2 TCs
    tm = max(8, min(512, _round_up(target, 8)))
    while tm > 64:
        conv_ws = (2 * tm * (k_main + k_sc) * mm_bytes       # patch tiles (x2 buf)
                   + 2 * (k_main + k_sc) * coutp * mm_bytes  # weight blocks (x2 buf)
                   + 4 * tm * coutp * 4)                     # acc (+accsc) out tiles
        epi_ws = 6 * tm * coutp * 4                          # epilogue in/in/out tiles
        if max(conv_ws, epi_ws) <= budget:
            break
        tm = _round_up(tm // 2, 8)
    nt = _cdiv(n, tm)
    ncores = 2 if nt >= 2 else 1
    ntc = _cdiv(nt, ncores)
    return tm, ncores, ntc


# ---------------------------------------------------------------------------
# CustomBasicBlock forward (Pallas version)
# ---------------------------------------------------------------------------

def custom_basic_block(x_nchw, params, stride, eps=1e-5, matmul_dtype=jnp.bfloat16):
    x = jnp.transpose(x_nchw, (0, 2, 3, 1)).astype(jnp.float32)   # NCHW -> NHWC
    B, H, W, Cin = x.shape
    Cout = params["w1"].shape[-1]
    Ho = (H + 2 - 3) // stride + 1
    Wo = (W + 2 - 3) // stride + 1
    N = B * Ho * Wo

    coutp = _round_up(Cout, _LANES)                  # lane-dense output channels
    mm_bytes = jnp.dtype(matmul_dtype).itemsize
    kpad = 16 if mm_bytes == 2 else 8
    k1p = _round_up(9 * Cin, kpad)
    k2p = _round_up(9 * Cout, kpad)
    kscp = _round_up(Cin, kpad) if "wsc" in params else 0

    tm, ncores, ntc = _plan_tiles(N, max(k1p, k2p), kscp, coutp, mm_bytes)
    np_ = ncores * ntc * tm                          # padded row count (zero rows)

    def pad_cast(a, rows, cols):
        return _pad2(a, rows, cols).astype(matmul_dtype)

    def ch(name):                                    # per-channel vector, lane-padded
        return jnp.pad(params[name].astype(jnp.float32), (0, coutp - Cout))

    # conv1 (3x3, stride, pad 1) + bn1 + relu.  Conv bias is dropped: train-mode
    # BN subtracts the batch mean so the bias cancels exactly.
    p1 = pad_cast(im2col(x, 3, stride, 1), np_, k1p)
    w1 = pad_cast(params["w1"].reshape(9 * Cin, Cout), k1p, coutp)
    acc1, st1 = conv_matmul_stats(p1, w1, tm, ncores, ntc)
    s1, t1 = _bn_scale_shift(st1, ch("g1"), ch("be1"), N, eps)
    # out1 written directly in the matmul dtype (bf16 default) -> it is conv2's
    # matmul operand anyway, so this is a free halving of its HBM traffic.
    out1 = bn_act(acc1, s1, t1, tm, relu=True, out_dtype=matmul_dtype)

    # conv2 (3x3, stride 1, pad 1, no bias) + bn2; projection shortcut fused in.
    out1_nhwc = out1[:N, :Cout].reshape(B, Ho, Wo, Cout)
    p2 = pad_cast(im2col(out1_nhwc, 3, 1, 1), np_, k2p)
    w2 = pad_cast(params["w2"].reshape(9 * Cout, Cout), k2p, coutp)

    if "wsc" in params:
        # 1x1 conv (stride) + bn shortcut, fused into the conv2 matmul+stats pass
        # (conv bias dropped, train-mode BN cancels it).
        xr = x[:, ::stride, ::stride, :].reshape(N, Cin)
        psc = pad_cast(xr, np_, kscp)
        wsc = pad_cast(params["wsc"], kscp, coutp)
        acc2, st2, accsc, stsc = conv_sc_matmul_stats(p2, w2, psc, wsc, tm, ncores, ntc)
        s2, t2 = _bn_scale_shift(st2, ch("g2"), ch("be2"), N, eps)
        ssc, tsc = _bn_scale_shift(stsc, ch("gsc"), ch("besc"), N, eps)
        sc = accsc
    else:
        acc2, st2 = conv_matmul_stats(p2, w2, tm, ncores, ntc)
        s2, t2 = _bn_scale_shift(st2, ch("g2"), ch("be2"), N, eps)
        # identity shortcut (stride==1 and Cin==Cout); padded lanes stay 0.
        sc = _pad2(x.reshape(N, Cin), np_, coutp)
        ssc = jnp.ones((1, coutp), jnp.float32)
        tsc = jnp.zeros((1, coutp), jnp.float32)

    # fused epilogue: bn2 + shortcut (BN or identity) + residual add + relu
    out = bn_add_relu(acc2, s2, t2, sc, ssc, tsc, tm)
    out = out[:N, :Cout].reshape(B, Ho, Wo, Cout)
    return jnp.transpose(out, (0, 3, 1, 2))          # NHWC -> NCHW


# ---------------------------------------------------------------------------
# Deterministic parameter init (shapes from the nn.Module __init__)
# ---------------------------------------------------------------------------

def init_params(key, in_planes, planes, stride):
    ks = jax.random.split(key, 11)
    p = {
        "w1": 0.2 * jax.random.normal(ks[0], (3, 3, in_planes, planes), jnp.float32),
        "b1": 0.1 * jax.random.normal(ks[1], (planes,), jnp.float32),
        "g1": 1.0 + 0.1 * jax.random.normal(ks[2], (planes,), jnp.float32),
        "be1": 0.1 * jax.random.normal(ks[3], (planes,), jnp.float32),
        "w2": 0.2 * jax.random.normal(ks[4], (3, 3, planes, planes), jnp.float32),
        "g2": 1.0 + 0.1 * jax.random.normal(ks[5], (planes,), jnp.float32),
        "be2": 0.1 * jax.random.normal(ks[6], (planes,), jnp.float32),
    }
    if stride != 1 or in_planes != planes:
        p["wsc"] = 0.2 * jax.random.normal(ks[7], (in_planes, planes), jnp.float32)
        p["bsc"] = 0.1 * jax.random.normal(ks[8], (planes,), jnp.float32)
        p["gsc"] = 1.0 + 0.1 * jax.random.normal(ks[9], (planes,), jnp.float32)
        p["besc"] = 0.1 * jax.random.normal(ks[10], (planes,), jnp.float32)
    return p


# ---------------------------------------------------------------------------
# Pure-JAX reference (uses the conv biases -> verifies they cancel under BN)
# ---------------------------------------------------------------------------

def ref_block(x_nchw, p, stride, eps=1e-5):
    x = jnp.transpose(x_nchw, (0, 2, 3, 1)).astype(jnp.float32)

    def conv(x, w_hwio, s, pad):
        return jax.lax.conv_general_dilated(
            x, w_hwio, (s, s), ((pad, pad), (pad, pad)),
            dimension_numbers=("NHWC", "HWIO", "NHWC"),
            precision=jax.lax.Precision.HIGHEST)

    def bn(x, g, b):
        m = jnp.mean(x, axis=(0, 1, 2), keepdims=True)
        v = jnp.mean((x - m) ** 2, axis=(0, 1, 2), keepdims=True)
        return (x - m) * jax.lax.rsqrt(v + eps) * g + b

    out = jax.nn.relu(bn(conv(x, p["w1"], stride, 1) + p["b1"], p["g1"], p["be1"]))
    out = bn(conv(out, p["w2"], 1, 1), p["g2"], p["be2"])
    if "wsc" in p:
        sc = bn(conv(x, p["wsc"][None, None], stride, 0) + p["bsc"],
                p["gsc"], p["besc"])
    else:
        sc = x
    out = jax.nn.relu(out + sc)
    return jnp.transpose(out, (0, 3, 1, 2))


# ---------------------------------------------------------------------------

if __name__ == "__main__":
    key = jax.random.PRNGKey(0)
    k_xa, k_pa, k_xb, k_pb, k_xc, k_pc = jax.random.split(key, 6)

    # Case A: projection shortcut (4 -> 8 channels, stride 2), single row tile.
    # f32 operand path first (tight tolerance), then the default bf16 path.
    xa = jax.random.normal(k_xa, (2, 4, 16, 16), jnp.float32)
    pa = init_params(k_pa, 4, 8, 2)
    refa = ref_block(xa, pa, 2)
    outa32 = jax.block_until_ready(
        custom_basic_block(xa, pa, 2, matmul_dtype=jnp.float32))
    assert outa32.shape == (2, 8, 8, 8), outa32.shape
    assert jnp.allclose(outa32, refa, rtol=2e-3, atol=2e-3), \
        float(jnp.max(jnp.abs(outa32 - refa)))
    outa16 = jax.block_until_ready(custom_basic_block(xa, pa, 2))   # bf16 default
    assert jnp.allclose(outa16, refa, rtol=5e-2, atol=5e-2), \
        float(jnp.max(jnp.abs(outa16 - refa)))

    # Case B: identity shortcut (8 -> 8, stride 1); N=512 -> two row tiles that
    # land in separate per-core stats slots (megacore path).  f32 operands.
    xb = jax.random.normal(k_xb, (2, 8, 16, 16), jnp.float32)
    pb = init_params(k_pb, 8, 8, 1)
    refb = ref_block(xb, pb, 1)
    outb = jax.block_until_ready(
        custom_basic_block(xb, pb, 1, matmul_dtype=jnp.float32))
    assert outb.shape == (2, 8, 16, 16), outb.shape
    assert jnp.allclose(outb, refb, rtol=2e-3, atol=2e-3), \
        float(jnp.max(jnp.abs(outb - refb)))

    # Case C: projection shortcut, N=1024 rows (2 cores x TM=512), fused
    # conv2 + shortcut matmul/stats pass, default bf16 MXU operands.
    xc = jax.random.normal(k_xc, (4, 16, 32, 32), jnp.float32)
    pc = init_params(k_pc, 16, 32, 2)
    refc = ref_block(xc, pc, 2)
    outc = jax.block_until_ready(custom_basic_block(xc, pc, 2))
    assert outc.shape == (4, 32, 16, 16), outc.shape
    assert jnp.allclose(outc, refc, rtol=1e-1, atol=1e-1), \
        float(jnp.max(jnp.abs(outc - refc)))

    print("KERNEL_OK")
</pallas_src>

<mosaic_0001>
module attributes {stable_mosaic.version = 11 : i64} {
  func.func @_conv_stats_kernel(%arg0: i32, %arg1: i32, %arg2: memref<128x40xf32, #tpu.memory_space<vmem>>, %arg3: memref<40x128xf32, #tpu.memory_space<vmem>>, %arg4: memref<128x128xf32, #tpu.memory_space<vmem>>, %arg5: memref<8x128xf32, #tpu.memory_space<vmem>>) attributes {dimension_semantics = [#tpu.dimension_semantics<parallel>, #tpu.dimension_semantics<arbitrary>], iteration_bounds = array<i64: 1, 1>, scalar_prefetch = 0 : i64, scratch_operands = 0 : i64, tpu.core_type = #tpu.core_type<tc>, window_params = [{transform_indices = @transform_0, window_bounds = array<i64: 128, 40>}, {pipeline_mode = #tpu.pipeline_mode<synchronous>, transform_indices = @transform_1, window_bounds = array<i64: 40, 128>}, {transform_indices = @transform_2, window_bounds = array<i64: 128, 128>}, {transform_indices = @transform_3, window_bounds = array<i64: 8, 128>}]} {
    %c0 = arith.constant 0 : index
    %c0_0 = arith.constant 0 : index
    %0 = vector.load %arg2[%c0, %c0_0] : memref<128x40xf32, #tpu.memory_space<vmem>>, vector<128x40xf32>
    %c0_1 = arith.constant 0 : index
    %c0_2 = arith.constant 0 : index
    %1 = vector.load %arg3[%c0_1, %c0_2] : memref<40x128xf32, #tpu.memory_space<vmem>>, vector<40x128xf32>
    %cst = arith.constant dense<0.000000e+00> : vector<128x128xf32>
    %2 = tpu.matmul %0, %1, %cst {dimension_numbers = #tpu.dot_dimension_numbers<[1], [0], [0], [1], [0, 0, 1, 1], [], []>} : vector<128x40xf32>, vector<40x128xf32>, vector<128x128xf32> -> vector<128x128xf32>
    %c0_3 = arith.constant 0 : index
    %c0_4 = arith.constant 0 : index
    %3 = vector.load %arg4[%c0_3, %c0_4] : memref<128x128xf32, #tpu.memory_space<vmem>>, vector<128x128xf32>
    tpu.vector_store %arg4[%c0_3, %c0_4], %2 {strides = array<i32>} : memref<128x128xf32, #tpu.memory_space<vmem>>, vector<128x128xf32>,
    %c0_i32 = arith.constant 0 : i32
    %4 = arith.cmpi eq, %arg1, %c0_i32 : i32
    %5 = arith.extui %4 : i1 to i32
    %c0_i32_5 = arith.constant 0 : i32
    %6 = arith.cmpi ne, %5, %c0_i32_5 : i32
    scf.if %6 {
      %cst_15 = arith.constant 0.000000e+00 : f32
      %18 = vector.broadcast %cst_15 : f32 to vector<8x128xf32>
      %c0_16 = arith.constant 0 : index
      %c0_17 = arith.constant 0 : index
      %19 = vector.load %arg5[%c0_16, %c0_17] : memref<8x128xf32, #tpu.memory_space<vmem>>, vector<8x128xf32>
      tpu.vector_store %arg5[%c0_16, %c0_17], %18 {strides = array<i32>} : memref<8x128xf32, #tpu.memory_space<vmem>>, vector<8x128xf32>,
    } else {
    }
    %c0_6 = arith.constant 0 : index
    %c0_7 = arith.constant 0 : index
    %7 = vector.load %arg5[%c0_6, %c0_7] : memref<8x128xf32, #tpu.memory_space<vmem>>, vector<1x128xf32>
    %cst_8 = arith.constant dense<0.000000e+00> : vector<128xf32>
    %8 = vector.multi_reduction <add>, %2, %cst_8 [0] : vector<128x128xf32> to vector<128xf32>
    %9 = vector.shape_cast %8 : vector<128xf32> to vector<1x128xf32>
    %10 = arith.addf %7, %9 : vector<1x128xf32>
    %c0_9 = arith.constant 0 : index
    %c0_10 = arith.constant 0 : index
    %11 = vector.load %arg5[%c0_9, %c0_10] : memref<8x128xf32, #tpu.memory_space<vmem>>, vector<1x128xf32>
    tpu.vector_store %arg5[%c0_9, %c0_10], %10 {strides = array<i32>} : memref<8x128xf32, #tpu.memory_space<vmem>>, vector<1x128xf32>,
    %c1 = arith.constant 1 : index
    %c0_11 = arith.constant 0 : index
    %12 = vector.load %arg5[%c1, %c0_11] : memref<8x128xf32, #tpu.memory_space<vmem>>, vector<1x128xf32>
    %13 = arith.mulf %2, %2 : vector<128x128xf32>
    %cst_12 = arith.constant dense<0.000000e+00> : vector<128xf32>
    %14 = vector.multi_reduction <add>, %13, %cst_12 [0] : vector<128x128xf32> to vector<128xf32>
    %15 = vector.shape_cast %14 : vector<128xf32> to vector<1x128xf32>
    %16 = arith.addf %12, %15 : vector<1x128xf32>
    %c1_13 = arith.constant 1 : index
    %c0_14 = arith.constant 0 : index
    %17 = vector.load %arg5[%c1_13, %c0_14] : memref<8x128xf32, #tpu.memory_space<vmem>>, vector<1x128xf32>
    tpu.vector_store %arg5[%c1_13, %c0_14], %16 {strides = array<i32>} : memref<8x128xf32, #tpu.memory_space<vmem>>, vector<1x128xf32>,
    return
  }
  func.func @transform_0(%arg0: i32, %arg1: i32) -> (i32, i32) {
    %c1_i32 = arith.constant 1 : i32
    %0 = arith.muli %arg0, %c1_i32 : i32
    %1 = arith.addi %0, %arg1 : i32
    %c0_i32 = arith.constant 0 : i32
    %c0_i32_0 = arith.constant 0 : i32
    return %1, %c0_i32 : i32, i32
  }
  func.func @transform_1(%arg0: i32, %arg1: i32) -> (i32, i32) {
    %c0_i32 = arith.constant 0 : i32
    %c0_i32_0 = arith.constant 0 : i32
    %c0_i32_1 = arith.constant 0 : i32
    return %c0_i32, %c0_i32_0 : i32, i32
  }
  func.func @transform_2(%arg0: i32, %arg1: i32) -> (i32, i32) {
    %c1_i32 = arith.constant 1 : i32
    %0 = arith.muli %arg0, %c1_i32 : i32
    %1 = arith.addi %0, %arg1 : i32
    %c0_i32 = arith.constant 0 : i32
    %c0_i32_0 = arith.constant 0 : i32
    return %1, %c0_i32 : i32, i32
  }
  func.func @transform_3(%arg0: i32, %arg1: i32) -> (i32, i32) {
    %c0_i32 = arith.constant 0 : i32
    %c0_i32_0 = arith.constant 0 : i32
    return %arg0, %c0_i32 : i32, i32
  }
}

</mosaic_0001>

<bundles_post_ra>
// kernel: tpu_custom_call.1
= control target key start
LH: loop header
LB: loop body
LE: loop exit
PB: predicated region body
PF: predicated region fallthrough
CT: control target
= control target key end

     0   :  { %9 = vsyncpa [#allocation3], 0  ;;  %vm60_vm0 = vcmask 326656   ;;  %s631_s0 = inlined_call_operand.vmem [shape: f32[128,40], index: 0, kind: input, shape index: {}]   ;;  %s632_s1 = inlined_call_operand.vmem [shape: f32[40,128], index: 1, kind: input, shape index: {}]   ;;  %s633_s2 = inlined_call_operand.hbm [shape: f32[128,128], index: 2, kind: output, shape index: {0}]   ;;  %s634_s3 = inlined_call_operand.hbm [shape: f32[8,128], index: 3, kind: output, shape index: {1}]  }
   0x1   :  { %v59_v0 = vld [vmem:[%s632_s1 + $0x20] sm:$0xff]  ;;  %v58_v1 = vld [vmem:[%s632_s1 + $0x18] sm:$0xff]  ;;  %v57_v3 = vld [vmem:[%s632_s1 + $0x10] sm:$0xff] }
   0x2   :  { %416 = vmatprep.subr.mxu0 %v59_v0  ;;  %v39_v2 = vld [vmem:[%s631_s0] sm:$0xff]  ;;  %450 = vmatprep.subr.mxu1 %v59_v0  ;;  %v56_v4 = vld [vmem:[%s632_s1 + $0x8] sm:$0xff] }
   0x3   :  { %417 = vmatpush3.msra.mxu0 %v59_v0  ;;  %426 = vmatprep.mubr.msk.f32.mxu0 %vm60_vm0, %v39_v2  ;;  %v55_v5 = vld [vmem:[%s632_s1] sm:$0xff] }
   0x4   :  { %418 = vmatprep.subr.mxu0 %v58_v1  ;;  %455 = vmatpush3.msra.mxu1 %v59_v0 }
   0x5   :  { %419 = vmatpush3.msra.mxu0 %v58_v1  ;;  %451 = vmatprep.subr.mxu1 %v58_v1 }
   0x6   :  { %420 = vmatprep.subr.mxu0 %v57_v3  ;;  %456 = vmatpush3.msra.mxu1 %v58_v1 }
   0x7   :  { %421 = vmatpush3.msra.mxu0 %v57_v3  ;;  %452 = vmatprep.subr.mxu1 %v57_v3 }
   0x8   :  { %422 = vmatprep.subr.mxu0 %v56_v4  ;;  %457 = vmatpush3.msra.mxu1 %v57_v3 }
   0x9   :  { %10 = vsyncpa [#allocation5], 0  ;;  %423 = vmatpush3.msra.mxu0 %v56_v4  ;;  %v40_v6 = vld [vmem:[%s631_s0 + $0x8] sm:$0xff]  ;;  %453 = vmatprep.subr.mxu1 %v56_v4  ;;  %v41_v7 = vld [vmem:[%s631_s0 + $0x10] sm:$0xff]  ;;  %v509_v21 = vmov 0.0  }
   0xa   :  { %424 = vmatprep.subr.mxu0 %v55_v5  ;;  %458 = vmatpush3.msra.mxu1 %v56_v4  ;;  %v47_v8 = vld [vmem:[%s631_s0 + $0x40] sm:$0xff]  ;;  %v48_v9 = vld [vmem:[%s631_s0 + $0x48] sm:$0xff]  ;;  %v49_v10 = vld [vmem:[%s631_s0 + $0x50] sm:$0xff]  ;;  %274 = vst [vmem:[#allocation4] sm:$0xff] %v509_v21 }
   0xb   :  { %425 = vmatpush3.msra.mxu0 %v55_v5  ;;  %454 = vmatprep.subr.mxu1 %v55_v5  ;;  %v42_v11 = vld [vmem:[%s631_s0 + $0x18] sm:$0xff]  ;;  %v43_v12 = vld [vmem:[%s631_s0 + $0x20] sm:$0xff]  ;;  %v44_v15 = vld [vmem:[%s631_s0 + $0x28] sm:$0xff] }
   0xc   :  { %427 = vmatmul.mubr.msk.f32.vlgmr.msra.gmra.mxu0 %vm60_vm0, %v40_v6  ;;  %459 = vmatpush3.msra.mxu1 %v55_v5  ;;  %v50_v13 = vld [vmem:[%s631_s0 + $0x58] sm:$0xff]  ;;  %v51_v14 = vld [vmem:[%s631_s0 + $0x60] sm:$0xff]  ;;  %v45_v16 = vld [vmem:[%s631_s0 + $0x30] sm:$0xff] }
   0xd   :  { %429 = vmatprep.mubr.msk.f32.mxu0 %vm60_vm0, %v41_v7  ;;  %438 = vmatprep.mubr.msk.f32.mxu1 %vm60_vm0, %v47_v8  ;;  %v52_v17 = vld [vmem:[%s631_s0 + $0x68] sm:$0xff]  ;;  %v53_v18 = vld [vmem:[%s631_s0 + $0x70] sm:$0xff]  ;;  %v46_v19 = vld [vmem:[%s631_s0 + $0x38] sm:$0xff] }
   0xe   :  { %439 = vmatmul.mubr.msk.f32.vlgmr.msra.gmra.mxu1 %vm60_vm0, %v48_v9  ;;  %v54_v20 = vld [vmem:[%s631_s0 + $0x78] sm:$0xff]  ;;  %s510_s0 = smov [#allocation2]  }
   0xf   :  { %441 = vmatprep.mubr.msk.f32.mxu1 %vm60_vm0, %v49_v10  ;;  %s348_s26 = sshll.u32 %s510_s0, 4  ;;  %s349_s26 = int_to_ptr.vmem [resolvable:$true] %s348_s26 }
  0x10   :  { %430 = vmatmul.mubr.msk.f32.gmra.mxu0 %vm60_vm0, %v42_v11  ;;  %s465_s27 = scalar_lea.vmem %s349_s26, 2048  ;;  %p470_p1 = scmp.lt.s32.totalorder %s349_s26, %s349_s26 }
  0x11   :  { %432 = vmatprep.mubr.msk.f32.mxu0 %vm60_vm0, %v43_v12  ;;  %p466_p0 = scmp.ne.s32.totalorder %s349_s26, %s465_s27  ;;  %p471_p2 = scmp.lt.s32.totalorder %s465_s27, %s465_s27 }
  0x12   :  { %442 = vmatmul.mubr.msk.f32.gmra.mxu1 %vm60_vm0, %v50_v13 }
  0x13   :  { %444 = vmatprep.mubr.msk.f32.mxu1 %vm60_vm0, %v51_v14  ;;  %p472_p3 = por %p471_p2, %p470_p1 }
  0x14   :  { %433 = vmatmul.mubr.msk.f32.gmra.mxu0 %vm60_vm0, %v44_v15 }
  0x15   :  { %435 = vmatprep.mubr.msk.f32.mxu0 %vm60_vm0, %v45_v16  ;;  %p473_p4 = pnand %p472_p3, %p466_p0 }
  0x16   :  { %445 = vmatmul.mubr.msk.f32.gmra.mxu1 %vm60_vm0, %v52_v17 }
  0x17   :  { %447 = vmatprep.mubr.msk.f32.mxu1 %vm60_vm0, %v53_v18 }
  0x18   :  { %436 = vmatmul.mubr.msk.f32.gmra.mxu0 %vm60_vm0, %v46_v19 }
  0x1a   :  { %448 = vmatmul.mubr.msk.f32.gmra.mxu1 %vm60_vm0, %v54_v20 }
  0xcc   :  { %v428_v22 = vpop.f32.mrf.mxu0 }
  0xcd   :  { %255 = vst [vmem:[#allocation2 + $0x8] sm:$0xff] %v428_v22  ;;  %v301_v28 = vmul.f32 %v428_v22, %v428_v22 }
  0xce   :  { %v175_v23 = vpop.f32.mrf.mxu0  ;;  %v613_v24 = vpop.f32.mrf.mxu1 }
  0xcf   :  { %254 = vst [vmem:[#allocation2] sm:$0xff] %v175_v23  ;;  %v300_v25 = vmul.f32 %v175_v23, %v175_v23  ;;  %263 = vst [vmem:[#allocation2 + $0x48] sm:$0xff] %v613_v24  ;;  %v276_v29 = vadd.f32 %v428_v22, %v175_v23 }
  0xd0   :  { %v431_v26 = vpop.f32.mrf.mxu0  ;;  %v215_v27 = vpop.f32.mrf.mxu1 }
  0xd1   :  { %257 = vst [vmem:[#allocation2 + $0x18] sm:$0xff] %v431_v26  ;;  %262 = vst [vmem:[#allocation2 + $0x40] sm:$0xff] %v215_v27  ;;  %v316_v32 = vadd.f32 %v301_v28, %v300_v25  ;;  %v303_v37 = vmul.f32 %v431_v26, %v431_v26 }
  0xd2   :  { %v185_v30 = vpop.f32.mrf.mxu0  ;;  %v616_v31 = vpop.f32.mrf.mxu1 }
  0xd3   :  { %256 = vst [vmem:[#allocation2 + $0x10] sm:$0xff] %v185_v30  ;;  %v277_v33 = vadd.f32 %v276_v29, %v185_v30  ;;  %v302_v34 = vmul.f32 %v185_v30, %v185_v30  ;;  %265 = vst [vmem:[#allocation2 + $0x58] sm:$0xff] %v616_v31 }
  0xd4   :  { %v434_v35 = vpop.f32.mrf.mxu0  ;;  %v225_v36 = vpop.f32.mrf.mxu1 }
  0xd5   :  { %v317_v38 = vadd.f32 %v316_v32, %v302_v34  ;;  %259 = vst [vmem:[#allocation2 + $0x28] sm:$0xff] %v434_v35  ;;  %v278_v39 = vadd.f32 %v431_v26, %v277_v33  ;;  %264 = vst [vmem:[#allocation2 + $0x50] sm:$0xff] %v225_v36  ;;  %v305_v47 = vmul.f32 %v434_v35, %v434_v35 }
  0xd6   :  { %v195_v40 = vpop.f32.mrf.mxu0  ;;  %v446_v41 = vpop.f32.mrf.mxu1 }
  0xd7   :  { %258 = vst [vmem:[#allocation2 + $0x20] sm:$0xff] %v195_v40  ;;  %v279_v42 = vadd.f32 %v278_v39, %v195_v40  ;;  %v304_v43 = vmul.f32 %v195_v40, %v195_v40  ;;  %v318_v44 = vadd.f32 %v317_v38, %v303_v37  ;;  %267 = vst [vmem:[#allocation2 + $0x68] sm:$0xff] %v446_v41 }
  0xd8   :  { %v437_v45 = vpop.f32.mrf.mxu0  ;;  %v235_v46 = vpop.f32.mrf.mxu1 }
  0xd9   :  { %v319_v48 = vadd.f32 %v318_v44, %v304_v43  ;;  %261 = vst [vmem:[#allocation2 + $0x38] sm:$0xff] %v437_v45  ;;  %v280_v49 = vadd.f32 %v434_v35, %v279_v42  ;;  %266 = vst [vmem:[#allocation2 + $0x60] sm:$0xff] %v235_v46  ;;  %v307_v56 = vmul.f32 %v437_v45, %v437_v45 }
  0xda   :  { %v205_v50 = vpop.f32.mrf.mxu0  ;;  %v449_v51 = vpop.f32.mrf.mxu1 }
  0xdb   :  { %260 = vst [vmem:[#allocation2 + $0x30] sm:$0xff] %v205_v50  ;;  %v281_v52 = vadd.f32 %v280_v49, %v205_v50  ;;  %v306_v53 = vmul.f32 %v205_v50, %v205_v50  ;;  %v320_v54 = vadd.f32 %v319_v48, %v305_v47  ;;  %269 = vst [vmem:[#allocation2 + $0x78] sm:$0xff] %v449_v51 }
  0xdc   :  { %v245_v55 = vpop.f32.mrf.mxu1 }
  0xdd   :  { %v282_v57 = vadd.f32 %v437_v45, %v281_v52  ;;  %v321_v58 = vadd.f32 %v320_v54, %v306_v53  ;;  %268 = vst [vmem:[#allocation2 + $0x70] sm:$0xff] %v245_v55 }
  0xde   :  { %476 = shalt.err (!%p473_p4)
}
  0xdf   :  { %s511_s28 = smov 128   ;;  %s512_s29 = smov 8   ;;  %v322_v59 = vadd.f32 %v321_v58, %v307_v56  ;;  %v283_v60 = vadd.f32 %v282_v57, %v215_v27  ;;  %v308_v61 = vmul.f32 %v215_v27, %v215_v27  ;;  %v309_v62 = vmul.f32 %v613_v24, %v613_v24  ;;  %v275_v29 = vld [vmem:[#allocation4] sm:$0x1]  ;;  %v299_v32 = vld [vmem:[#allocation4 + $0x1] sm:$0x1] }
  0xe0   :  { %354 = dma.vmem_to_hbm [thread:$0]  %s349_s26, 2048, %s633_s2, [#allocation3], %s511_s28, %s511_s28, %s512_s29   ;;  %v310_v2 = vmul.f32 %v225_v36, %v225_v36  ;;  %v311_v4 = vmul.f32 %v616_v31, %v616_v31  ;;  %v312_v8 = vmul.f32 %v235_v46, %v235_v46  ;;  %v313_v10 = vmul.f32 %v446_v41, %v446_v41 }
  0xe1   :  { %v323_v63 = vadd.f32 %v322_v59, %v308_v61  ;;  %v284_v0 = vadd.f32 %v613_v24, %v283_v60  ;;  %v314_v14 = vmul.f32 %v245_v55, %v245_v55  ;;  %v315_v16 = vmul.f32 %v449_v51, %v449_v51  ;;  %s513_s2 = smov [#allocation4]  }
  0xe2   :  { %s361_s4 = sshll.u32 %s513_s2, 4  ;;  %s362_s4 = int_to_ptr.vmem [resolvable:$true] %s361_s4 }
  0xe3   :  { %v285_v1 = vadd.f32 %v284_v0, %v225_v36  ;;  %v324_v3 = vadd.f32 %v323_v63, %v309_v62  ;;  %s485_s5 = scalar_lea.vmem %s362_s4, 128  ;;  %p490_p6 = scmp.lt.s32.totalorder %s362_s4, %s362_s4 }
  0xe4   :  { %p486_p5 = scmp.ne.s32.totalorder %s362_s4, %s485_s5  ;;  %p491_p7 = scmp.lt.s32.totalorder %s485_s5, %s485_s5 }
  0xe5   :  { %v325_v5 = vadd.f32 %v324_v3, %v310_v2  ;;  %v286_v6 = vadd.f32 %v616_v31, %v285_v1 }
  0xe6   :  { %p492_p8 = por %p491_p7, %p490_p6 }
  0xe7   :  { %v287_v7 = vadd.f32 %v286_v6, %v235_v46  ;;  %v326_v9 = vadd.f32 %v325_v5, %v311_v4 }
  0xe8   :  { %p493_p9 = pnand %p492_p8, %p486_p5 }
  0xe9   :  { %v327_v11 = vadd.f32 %v326_v9, %v312_v8  ;;  %v288_v12 = vadd.f32 %v446_v41, %v287_v7 }
  0xeb   :  { %v289_v13 = vadd.f32 %v288_v12, %v245_v55  ;;  %v328_v15 = vadd.f32 %v327_v11, %v313_v10 }
  0xed   :  { %v290_v17 = vadd.f32 %v449_v51, %v289_v13  ;;  %v329_v18 = vadd.f32 %v328_v15, %v314_v14 }
  0xef   :  { %v291_v19 = vrot.slane %v290_v17, 4  ;;  %v330_v20 = vadd.f32 %v329_v18, %v315_v16 }
  0xf1   :  { %v292_v21 = vadd.f32 %v291_v19, %v290_v17  ;;  %v331_v22 = vrot.slane %v330_v20, 4 }
  0xf3   :  { %v293_v23 = vrot.slane %v292_v21, 2  ;;  %v332_v24 = vadd.f32 %v331_v22, %v330_v20 }
  0xf5   :  { %v294_v25 = vadd.f32 %v293_v23, %v292_v21  ;;  %v333_v26 = vrot.slane %v332_v24, 2 }
  0xf7   :  { %v295_v27 = vrot.slane %v294_v25, 1  ;;  %v334_v28 = vadd.f32 %v333_v26, %v332_v24 }
  0xf9   :  { %v296_v30 = vadd.f32 %v295_v27, %v294_v25  ;;  %v335_v31 = vrot.slane %v334_v28, 1 }
  0xfb   :  { %v297_v33 = vadd.f32 %v296_v30, %v275_v29  ;;  %v336_v34 = vadd.f32 %v335_v31, %v334_v28 }
  0xfd   :  { %298 = vst [vmem:[#allocation4] sm:$0x1] %v297_v33  ;;  %v337_v35 = vadd.f32 %v336_v34, %v299_v32 }
  0xff   :  { %338 = vst [vmem:[#allocation4 + $0x1] sm:$0x1] %v337_v35 }
 0x100   :  { %496 = shalt.err (!%p493_p9)
}
 0x101   :  { %364 = dma.vmem_to_hbm [thread:$0]  %s362_s4, 128, %s634_s3, [#allocation5]  }
 0x102   :  { %505 = dma.done.wait [#allocation3], 2048  }
 0x103   :  { %506 = vsyncadd [#allocation3], 4294965248 }
 0x104   :  { %507 = dma.done.wait [#allocation5], 128  }
 0x105   :  { %508 = vsyncadd [#allocation5], 4294967168 }
 0x106   :  { %371 = vsyncpa [#allocation3], 1 }
 0x107   :  { %372 = vsyncpa [#allocation5], 1 }

</bundles_post_ra>
